<compile_context>
chip_gen: v6e
topology: v6e:2x2x1
jax: 0.10.0
libtpu: 0.0.40
codegen_flags: <defaults>
</compile_context>

<pallas_src>
import jax
import jax.numpy as jnp
from jax.experimental import pallas as pl
from jax.experimental.pallas import tpu as pltpu


def _proj_kernel(x_ref, w_ref, b_ref, o_ref):
    # x_ref: (tm, K) bf16   w_ref: (K, E_pad) bf16
    # b_ref: (1, E_pad) f32 o_ref: (tm, E_pad) out dtype
    acc = jnp.dot(x_ref[...], w_ref[...], preferred_element_type=jnp.float32)
    o_ref[...] = (acc + b_ref[...]).astype(o_ref.dtype)


def _round_up(x, m):
    return -(-x // m) * m


def _default_target_tm():
    """Generation-aware row-tile target (rows of the (M, E_pad) output)."""
    try:
        kind = jax.devices()[0].device_kind.lower()
    except Exception:
        kind = ""
    if "v7" in kind:
        # 3.2 TB/s HBM: amortize per-step overhead; 2x f32 out @ 2048 rows x
        # E_pad=1152 ~ 18.9 MiB fits the 32 MiB default scoped VMEM.
        return 2048
    # v6e (32 MiB scoped) and v5e (16 MiB scoped): ~9.4 MiB double-buffered
    # f32 output at 1024 rows fits with headroom on both.
    return 1024


def _pick_tm(M, target_tm):
    """Row tile: big, aligned, and (when M allows) leaving >= 2 grid steps."""
    if M >= target_tm:
        tm = target_tm
    elif M >= 128:
        tm = _round_up(M, 128)        # full MXU passes, safe for bf16/f32 out
    else:
        tm = _round_up(M, 16)         # bf16 output needs sublane multiple of 16
    # Keep >= 2 grid steps when there's enough work so both v7x TensorCores
    # get a share under dimension_semantics=("parallel",).
    if M >= 256 and pl.cdiv(M, tm) < 2:
        tm = _round_up(pl.cdiv(M, 2), 128)
    return tm


def prepare_proj_params(weight, bias):
    """One-time prep of Conv2d params: (E, C, p, p) OIHW -> lane-dense (K, E_pad).

    Call once and cache the result; patch_embed_forward_prepped skips the
    per-call reshape/transpose/cast/pad XLA ops entirely.
    """
    E = weight.shape[0]
    K = weight.shape[1] * weight.shape[2] * weight.shape[3]
    w = weight.reshape(E, K).T.astype(jnp.bfloat16)         # (K, E)
    b = bias.astype(jnp.float32).reshape(1, E)               # (1, E)
    E_pad = _round_up(E, 128)                                 # lane-dense output
    if E_pad != E:
        w = jnp.pad(w, ((0, 0), (0, E_pad - E)))
        b = jnp.pad(b, ((0, 0), (0, E_pad - E)))
    return w, b, E


def patch_embed_forward_prepped(x, w, b, patch_size, *, out_dtype=None,
                                target_tm=None):
    """x: (B, C, H, W); w: (K, E_pad) bf16; b: (1, E_pad) f32.
    Returns (M, E_pad) projected patches, M = B*(H//p)*(W//p)."""
    B, C, H, W = x.shape
    p = patch_size
    Hp, Wp = H // p, W // p
    N = Hp * Wp
    K = C * p * p
    M = B * N
    E_pad = w.shape[1]
    out_dtype = x.dtype if out_dtype is None else out_dtype
    target_tm = _default_target_tm() if target_tm is None else target_tm

    # Glue: extract non-overlapping patches -> (M, K), channel-major within a
    # patch to match Conv2d's (c, kh, kw) reduction order; bf16 halves the HBM
    # traffic of the materialized (M, K) matrix and hits the native MXU path.
    xp = x.reshape(B, C, Hp, p, Wp, p)
    xp = xp.transpose(0, 2, 4, 1, 3, 5).reshape(M, K).astype(jnp.bfloat16)

    tm = _pick_tm(M, target_tm)
    grid_m = pl.cdiv(M, tm)   # ragged last block: OOB reads are per-row garbage,
                              # OOB output rows are masked on write -> no jnp.pad.

    out_bytes = jnp.dtype(out_dtype).itemsize
    cost = pl.CostEstimate(
        flops=2 * M * K * E_pad,
        transcendentals=0,
        bytes_accessed=M * K * 2 + K * E_pad * 2 + E_pad * 4 + M * E_pad * out_bytes,
    )

    out = pl.pallas_call(
        _proj_kernel,
        out_shape=jax.ShapeDtypeStruct((M, E_pad), out_dtype),
        grid_spec=pltpu.PrefetchScalarGridSpec(
            num_scalar_prefetch=0,
            grid=(grid_m,),
            in_specs=[
                pl.BlockSpec((tm, K), lambda i: (i, 0)),
                pl.BlockSpec((K, E_pad), lambda i: (0, 0)),   # VMEM-resident
                pl.BlockSpec((1, E_pad), lambda i: (0, 0)),   # VMEM-resident
            ],
            out_specs=pl.BlockSpec((tm, E_pad), lambda i: (i, 0)),
        ),
        compiler_params=pltpu.CompilerParams(
            dimension_semantics=("parallel",)),
        cost_estimate=cost,
    )(xp, w, b)
    return out


def patch_embed_forward(x, weight, bias, patch_size, *, out_dtype=None,
                        target_tm=None):
    """Convenience wrapper: raw Conv2d OIHW weight + bias.
       Returns (B, N, embed_dim), N = (H//p)*(W//p).
       Set out_dtype=jnp.bfloat16 if downstream blocks run in bf16 (~2x faster
       since the output store dominates HBM traffic)."""
    B, C, H, W = x.shape
    p = patch_size
    N = (H // p) * (W // p)
    w, b, E = prepare_proj_params(weight, bias)
    out = patch_embed_forward_prepped(x, w, b, p, out_dtype=out_dtype,
                                      target_tm=target_tm)
    out = out[:, :E]               # drop E padding (no-op for PixArt E=1152)
    # norm_layer=None -> nn.Identity, nothing to do.
    return out.reshape(B, N, E)


def _reference(x, weight, bias, patch_size):
    # Pure-JAX f32 reference: strided conv via lax.conv_general_dilated.
    y = jax.lax.conv_general_dilated(
        x, weight, window_strides=(patch_size, patch_size), padding="VALID",
        dimension_numbers=("NCHW", "OIHW", "NCHW"))
    y = y + bias.reshape(1, -1, 1, 1)
    B, E, Hp, Wp = y.shape
    return y.reshape(B, E, Hp * Wp).transpose(0, 2, 1)


if __name__ == "__main__":
    # Small shapes consistent with the module: patch_size=4, in_chans=4,
    # embed_dim=32, input (2, 4, 16, 16) -> output (2, 16, 32).
    patch_size, in_chans, embed_dim = 4, 4, 32
    B, H, W = 2, 16, 16

    key = jax.random.PRNGKey(0)
    kx, kw, kb = jax.random.split(key, 3)
    x = jax.random.normal(kx, (B, in_chans, H, W), dtype=jnp.float32)
    weight = jax.random.normal(
        kw, (embed_dim, in_chans, patch_size, patch_size), dtype=jnp.float32) * 0.02
    bias = jax.random.normal(kb, (embed_dim,), dtype=jnp.float32) * 0.02

    N = (H // patch_size) * (W // patch_size)
    ref = _reference(x, weight, bias, patch_size)

    # Default path: output dtype matches x.dtype (f32 here), bf16 inputs with
    # f32 MXU accumulation -> tolerance loosened vs the pure-f32 reference.
    out = jax.block_until_ready(patch_embed_forward(x, weight, bias, patch_size))
    assert out.shape == (B, N, embed_dim)
    assert jnp.allclose(out, ref, atol=2e-2, rtol=2e-2), "mismatch vs reference"

    # bf16-output path (recommended when the rest of PixArt runs in bf16):
    # halves the dominant (M, E) HBM store traffic.
    out_bf16 = jax.block_until_ready(
        patch_embed_forward(x, weight, bias, patch_size, out_dtype=jnp.bfloat16))
    assert out_bf16.shape == (B, N, embed_dim)
    assert jnp.allclose(out_bf16.astype(jnp.float32), ref, atol=5e-2, rtol=5e-2), \
        "bf16-output mismatch vs reference"

    print("KERNEL_OK")
</pallas_src>

<mosaic_0001>
module attributes {stable_mosaic.version = 11 : i64} {
  func.func @_proj_kernel(%arg0: i32, %arg1: memref<32x64xbf16, #tpu.memory_space<vmem>>, %arg2: memref<64x128xbf16, #tpu.memory_space<vmem>>, %arg3: memref<1x128xf32, #tpu.memory_space<vmem>>, %arg4: memref<32x128xf32, #tpu.memory_space<vmem>>) attributes {dimension_semantics = [#tpu.dimension_semantics<parallel>], iteration_bounds = array<i64: 1>, scalar_prefetch = 0 : i64, scratch_operands = 0 : i64, tpu.core_type = #tpu.core_type<tc>, window_params = [{transform_indices = @transform_0, window_bounds = array<i64: 32, 64>}, {pipeline_mode = #tpu.pipeline_mode<synchronous>, transform_indices = @transform_1, window_bounds = array<i64: 64, 128>}, {pipeline_mode = #tpu.pipeline_mode<synchronous>, transform_indices = @transform_2, window_bounds = array<i64: 1, 128>}, {transform_indices = @transform_3, window_bounds = array<i64: 32, 128>}]} {
    %c0 = arith.constant 0 : index
    %c0_0 = arith.constant 0 : index
    %0 = vector.load %arg1[%c0, %c0_0] : memref<32x64xbf16, #tpu.memory_space<vmem>>, vector<32x64xbf16>
    %c0_1 = arith.constant 0 : index
    %c0_2 = arith.constant 0 : index
    %1 = vector.load %arg2[%c0_1, %c0_2] : memref<64x128xbf16, #tpu.memory_space<vmem>>, vector<64x128xbf16>
    %cst = arith.constant dense<0.000000e+00> : vector<32x128xf32>
    %2 = tpu.matmul %0, %1, %cst {dimension_numbers = #tpu.dot_dimension_numbers<[1], [0], [0], [1], [0, 0, 1, 1], [], []>} : vector<32x64xbf16>, vector<64x128xbf16>, vector<32x128xf32> -> vector<32x128xf32>
    %c0_3 = arith.constant 0 : index
    %c0_4 = arith.constant 0 : index
    %3 = vector.load %arg3[%c0_3, %c0_4] : memref<1x128xf32, #tpu.memory_space<vmem>>, vector<1x128xf32>
    %4 = vector.broadcast %3 : vector<1x128xf32> to vector<32x128xf32>
    %5 = arith.addf %2, %4 : vector<32x128xf32>
    %c0_5 = arith.constant 0 : index
    %c0_6 = arith.constant 0 : index
    %6 = vector.load %arg4[%c0_5, %c0_6] : memref<32x128xf32, #tpu.memory_space<vmem>>, vector<32x128xf32>
    tpu.vector_store %arg4[%c0_5, %c0_6], %5 {strides = array<i32>} : memref<32x128xf32, #tpu.memory_space<vmem>>, vector<32x128xf32>,
    return
  }
  func.func @transform_0(%arg0: i32) -> (i32, i32) {
    %c0_i32 = arith.constant 0 : i32
    %c0_i32_0 = arith.constant 0 : i32
    return %arg0, %c0_i32 : i32, i32
  }
  func.func @transform_1(%arg0: i32) -> (i32, i32) {
    %c0_i32 = arith.constant 0 : i32
    %c0_i32_0 = arith.constant 0 : i32
    %c0_i32_1 = arith.constant 0 : i32
    return %c0_i32, %c0_i32_0 : i32, i32
  }
  func.func @transform_2(%arg0: i32) -> (i32, i32) {
    %c0_i32 = arith.constant 0 : i32
    %c0_i32_0 = arith.constant 0 : i32
    %c0_i32_1 = arith.constant 0 : i32
    return %c0_i32, %c0_i32_0 : i32, i32
  }
  func.func @transform_3(%arg0: i32) -> (i32, i32) {
    %c0_i32 = arith.constant 0 : i32
    %c0_i32_0 = arith.constant 0 : i32
    return %arg0, %c0_i32 : i32, i32
  }
}

</mosaic_0001>

<bundles_post_ra>
// kernel: tpu_custom_call.1
= control target key start
LH: loop header
LB: loop body
LE: loop exit
PB: predicated region body
PF: predicated region fallthrough
CT: control target
= control target key end

     0   :  { %8 = vsyncpa [#allocation3], 0  ;;  %s320_s0 = inlined_call_operand.hbm [shape: bf16[32,64], index: 0, kind: input, shape index: {}]   ;;  %s321_s1 = inlined_call_operand.hbm [shape: bf16[64,128], index: 1, kind: input, shape index: {}]   ;;  %s322_s2 = inlined_call_operand.vmem [shape: f32[1,128], index: 2, kind: input, shape index: {}]   ;;  %s323_s3 = inlined_call_operand.hbm [shape: f32[32,128], index: 3, kind: output, shape index: {}]  }
   0x1   :  { %9 = vsyncpa [#allocation6], 0 }
   0x2   :  { %10 = vsyncpa [#allocation4], 0  ;;  %s281_s12 = smov [#allocation2]  }
   0x3   :  { %s16_s13 = sshll.u32 %s281_s12, 4  ;;  %s17_s13 = int_to_ptr.vmem [resolvable:$true] %s16_s13 }
   0x4   :  { %s223_s14 = scalar_lea.vmem %s17_s13, 256  ;;  %p228_p1 = scmp.lt.s32.totalorder %s17_s13, %s17_s13 }
   0x5   :  { %p224_p0 = scmp.ne.s32.totalorder %s17_s13, %s223_s14  ;;  %p229_p2 = scmp.lt.s32.totalorder %s223_s14, %s223_s14 }
   0x7   :  { %p230_p3 = por %p229_p2, %p228_p1 }
   0x9   :  { %p231_p4 = pnand %p230_p3, %p224_p0 }
   0xb   :  { %234 = shalt.err (!%p231_p4)
}
   0xc   :  { %s282_s15 = smov 64   ;;  %s283_s16 = smov 4  }
   0xd   :  { %22 = dma.hbm_to_vmem [thread:$0]  %s320_s0, 256, %s17_s13, [#allocation3], %s282_s15, %s282_s15, %s283_s16  }
   0xe   :  { %s284_s19 = smov [#allocation5]  }
   0xf   :  { %s28_s20 = sshll.u32 %s284_s19, 4  ;;  %s29_s20 = int_to_ptr.vmem [resolvable:$true] %s28_s20 }
  0x10   :  { %s243_s21 = scalar_lea.vmem %s29_s20, 512  ;;  %p248_p6 = scmp.lt.s32.totalorder %s29_s20, %s29_s20 }
  0x11   :  { %p244_p5 = scmp.ne.s32.totalorder %s29_s20, %s243_s21  ;;  %p249_p7 = scmp.lt.s32.totalorder %s243_s21, %s243_s21 }
  0x13   :  { %p250_p8 = por %p249_p7, %p248_p6 }
  0x15   :  { %p251_p9 = pnand %p250_p8, %p244_p5 }
  0x17   :  { %254 = shalt.err (!%p251_p9)
}
  0x18   :  { %34 = dma.hbm_to_vmem [thread:$0]  %s321_s1, 512, %s29_s20, [#allocation6], %s282_s15, %s282_s15, %s283_s16  }
  0x19   :  { %275 = dma.done.wait [#allocation3], 256  }
  0x1a   :  { %276 = vsyncadd [#allocation3], 4294967040 }
  0x1b   :  { %277 = dma.done.wait [#allocation6], 512  }
  0x1c   :  { %278 = vsyncadd [#allocation6], 4294966784  ;;  %v209_v0 = vld [vmem:[#allocation5 + $0x18] sm:$0xff]   ;;  %v210_v1 = vld [vmem:[#allocation5 + $0x10] sm:$0xff]   ;;  %vm97_vm0 = vcmask 523264   ;;  %s285_s24 = smov [#allocation7]  }
  0x1d   :  { %190 = vmatprep.subr.bf16.mxu0 %v209_v0  ;;  %v211_v2 = vld [vmem:[#allocation5 + $0x8] sm:$0xff]   ;;  %v213_v3 = vld [vmem:[#allocation2] sm:$0xff]   ;;  %v212_v4 = vld [vmem:[#allocation5] sm:$0xff]   ;;  %s162_s25 = sshll.u32 %s285_s24, 4  ;;  %s163_s25 = int_to_ptr.vmem [resolvable:$true] %s162_s25 }
  0x1e   :  { %191 = vmatpush3.bf16.msra.mxu0 %v209_v0  ;;  %198 = vmatprep.mubr.msk.bf16.mxu0 %vm97_vm0, %v213_v3  ;;  %v214_v5 = vld [vmem:[#allocation2 + $0x8] sm:$0xff]   ;;  %v175_v6 = vld [vmem:[%s322_s2] ss:$0 sm:$0xff]  ;;  %s255_s26 = scalar_lea.vmem %s163_s25, 512  ;;  %p260_p11 = scmp.lt.s32.totalorder %s163_s25, %s163_s25 }
  0x1f   :  { %192 = vmatprep.subr.bf16.mxu0 %v210_v1  ;;  %p256_p10 = scmp.ne.s32.totalorder %s163_s25, %s255_s26  ;;  %p261_p12 = scmp.lt.s32.totalorder %s255_s26, %s255_s26 }
  0x21   :  { %p262_p13 = por %p261_p12, %p260_p11 }
  0x22   :  { %193 = vmatpush3.bf16.msra.mxu0 %v210_v1 }
  0x23   :  { %194 = vmatprep.subr.bf16.mxu0 %v211_v2  ;;  %p263_p0 = pnand %p262_p13, %p256_p10 }
  0x26   :  { %195 = vmatpush3.bf16.msra.mxu0 %v211_v2 }
  0x27   :  { %196 = vmatprep.subr.bf16.mxu0 %v212_v4 }
  0x2a   :  { %197 = vmatpush3.bf16.msra.mxu0 %v212_v4 }
  0x2d   :  { %199 = vmatmul.mubr.msk.bf16.vlgmr.msra.gmra.mxu0 %vm97_vm0, %v214_v5 }
  0xed   :  { %v200_v7 = vpop.f32.mrf.mxu0 }
  0xee   :  { %v147_v8 = vadd.f32 %v200_v7, %v175_v6 }
  0xef   :  { %v138_v9 = vpop.f32.mrf.mxu0 }
  0xf0   :  { %155 = vst [vmem:[#allocation7 + $0x10] sm:$0xff] %v147_v8  ;;  %v139_v10 = vadd.f32 %v175_v6, %v138_v9 }
  0xf1   :  { %v201_v11 = vpop.f32.mrf.mxu0 }
  0xf2   :  { %153 = vst [vmem:[#allocation7] sm:$0xff] %v139_v10  ;;  %v150_v12 = vadd.f32 %v201_v11, %v175_v6 }
  0xf3   :  { %v141_v13 = vpop.f32.mrf.mxu0 }
  0xf4   :  { %156 = vst [vmem:[#allocation7 + $0x18] sm:$0xff] %v150_v12  ;;  %v142_v14 = vadd.f32 %v175_v6, %v141_v13 }
  0xf6   :  { %154 = vst [vmem:[#allocation7 + $0x8] sm:$0xff] %v142_v14 }
  0xf7   :  { %266 = shalt.err (!%p263_p0)
}
  0xf8   :  { %s286_s2 = smov 128   ;;  %s287_s27 = smov 8  }
  0xf9   :  { %168 = dma.vmem_to_hbm [thread:$0]  %s163_s25, 512, %s323_s3, [#allocation4], %s286_s2, %s286_s2, %s287_s27  }
  0xfa   :  { %279 = dma.done.wait [#allocation4], 512  }
  0xfb   :  { %280 = vsyncadd [#allocation4], 4294966784 }
  0xfc   :  { %172 = vsyncpa [#allocation3], 1 }
  0xfd   :  { %173 = vsyncpa [#allocation6], 1 }
  0xfe   :  { %174 = vsyncpa [#allocation4], 1 }

</bundles_post_ra>
